<compile_context>
chip_gen: v5e
topology: v5e:2x2
jax: 0.10.0
libtpu: 0.0.40
codegen_flags: <defaults>
</compile_context>

<pallas_src>
import functools

import jax
import jax.numpy as jnp
from jax.experimental import pallas as pl
from jax.experimental.pallas import tpu as pltpu

_LANES = 128
_MAX_TILE_ROWS = 2048  # (2048, 128) f32 tile = 1 MiB per input per pipeline buffer


def _round_up(x, m):
    return ((x + m - 1) // m) * m


def _msed_loss_kernel(fake_ref, real_ref, loss_d_ref, loss_real_ref,
                      loss_fake_ref, acc_ref, *, inv_n_real, inv_n_fake):
    pid = pl.program_id(0)

    @pl.when(pid == 0)
    def _init():
        acc_ref[0] = jnp.float32(0.0)
        acc_ref[1] = jnp.float32(0.0)

    # Hot path: VPU squared error + XLU full reduce, accumulated in SMEM.
    real = real_ref[...]
    fake = fake_ref[...]
    diff_real = real - jnp.float32(1.0)
    acc_ref[0] += jnp.sum(diff_real * diff_real)
    acc_ref[1] += jnp.sum(fake * fake)

    @pl.when(pid == pl.num_programs(0) - 1)
    def _finalize():
        loss_real = acc_ref[0] * jnp.float32(inv_n_real)
        loss_fake = acc_ref[1] * jnp.float32(inv_n_fake)
        loss_real_ref[0, 0] = loss_real
        loss_fake_ref[0, 0] = loss_fake
        loss_d_ref[0, 0] = loss_real + loss_fake


def msed_loss(score_fake, score_real, *, max_tile_rows=_MAX_TILE_ROWS):
    """Pallas implementation of MSEDLoss.forward.

    Arguments are arbitrary-rank score tensors (e.g. (B, C, T)).
    Returns (loss_d, loss_real, loss_fake) as float32 scalars.
    """
    fake_flat = jnp.asarray(score_fake).astype(jnp.float32).reshape(-1)
    real_flat = jnp.asarray(score_real).astype(jnp.float32).reshape(-1)
    n_fake = fake_flat.shape[0]
    n_real = real_flat.shape[0]

    # Lane-dense slab: pad both tensors to a common (total_rows, 128) shape.
    rows_needed = max(1, -(-max(n_fake, n_real) // _LANES))
    tile_rows = min(max_tile_rows, _round_up(rows_needed, 8))
    tile_rows = _round_up(tile_rows, 8)
    total_rows = _round_up(rows_needed, tile_rows)
    num_tiles = total_rows // tile_rows
    padded_n = total_rows * _LANES

    # Padding values are chosen so padding contributes 0 to each SSE sum:
    # real padded with 1.0 ((1-1)^2 == 0), fake padded with 0.0 (0^2 == 0).
    fake2d = jnp.pad(fake_flat, (0, padded_n - n_fake),
                     constant_values=0.0).reshape(total_rows, _LANES)
    real2d = jnp.pad(real_flat, (0, padded_n - n_real),
                     constant_values=1.0).reshape(total_rows, _LANES)

    kernel = functools.partial(
        _msed_loss_kernel,
        inv_n_real=1.0 / float(n_real),   # divide by TRUE N, not padded size
        inv_n_fake=1.0 / float(n_fake),
    )

    scalar_out = jax.ShapeDtypeStruct((1, 1), jnp.float32)
    scalar_spec = pl.BlockSpec(memory_space=pltpu.SMEM)

    loss_d, loss_real, loss_fake = pl.pallas_call(
        kernel,
        out_shape=(scalar_out, scalar_out, scalar_out),
        grid=(num_tiles,),
        in_specs=[
            pl.BlockSpec((tile_rows, _LANES), lambda i: (i, 0)),
            pl.BlockSpec((tile_rows, _LANES), lambda i: (i, 0)),
        ],
        out_specs=(scalar_spec, scalar_spec, scalar_spec),
        scratch_shapes=[pltpu.SMEM((2,), jnp.float32)],
        compiler_params=pltpu.CompilerParams(
            dimension_semantics=("arbitrary",)),  # reduction axis
    )(fake2d, real2d)

    return loss_d[0, 0], loss_real[0, 0], loss_fake[0, 0]


def _reference(score_fake, score_real):
    ref_real = jnp.mean((score_real.astype(jnp.float32) - 1.0) ** 2)
    ref_fake = jnp.mean(score_fake.astype(jnp.float32) ** 2)
    return ref_real + ref_fake, ref_real, ref_fake


if __name__ == "__main__":
    key = jax.random.PRNGKey(0)
    k_fake, k_real, k_fake2, k_real2 = jax.random.split(key, 4)

    # Small shapes consistent with discriminator score tensors: (B, C, T)
    B, C, T = 2, 4, 16
    score_fake = jax.random.normal(k_fake, (B, C, T), dtype=jnp.float32)
    score_real = jax.random.normal(k_real, (B, C, T), dtype=jnp.float32)

    out = msed_loss(score_fake, score_real)
    jax.block_until_ready(out)
    loss_d, loss_real, loss_fake = out

    ref_d, ref_real, ref_fake = _reference(score_fake, score_real)
    assert jnp.allclose(loss_real, ref_real, rtol=1e-5, atol=1e-6)
    assert jnp.allclose(loss_fake, ref_fake, rtol=1e-5, atol=1e-6)
    assert jnp.allclose(loss_d, ref_d, rtol=1e-5, atol=1e-6)

    # Second (still small) case with a non-128-multiple T, forcing the
    # multi-tile reduction-grid path via a small tile size.
    B2, C2, T2 = 2, 4, 1000
    score_fake2 = jax.random.normal(k_fake2, (B2, C2, T2), dtype=jnp.float32)
    score_real2 = jax.random.normal(k_real2, (B2, C2, T2), dtype=jnp.float32)

    out2 = msed_loss(score_fake2, score_real2, max_tile_rows=16)
    jax.block_until_ready(out2)
    loss_d2, loss_real2, loss_fake2 = out2

    ref_d2, ref_real2, ref_fake2 = _reference(score_fake2, score_real2)
    assert jnp.allclose(loss_real2, ref_real2, rtol=1e-5, atol=1e-6)
    assert jnp.allclose(loss_fake2, ref_fake2, rtol=1e-5, atol=1e-6)
    assert jnp.allclose(loss_d2, ref_d2, rtol=1e-5, atol=1e-6)

    print("KERNEL_OK")
</pallas_src>

<mosaic_0001>
module attributes {stable_mosaic.version = 11 : i64} {
  func.func @_msed_loss_kernel(%arg0: i32, %arg1: memref<8x128xf32, #tpu.memory_space<vmem>>, %arg2: memref<8x128xf32, #tpu.memory_space<vmem>>, %arg3: memref<1x1xf32, #tpu.memory_space<smem>>, %arg4: memref<1x1xf32, #tpu.memory_space<smem>>, %arg5: memref<1x1xf32, #tpu.memory_space<smem>>, %arg6: memref<2xf32, #tpu.memory_space<smem>>) attributes {dimension_semantics = [#tpu.dimension_semantics<arbitrary>], iteration_bounds = array<i64: 1>, scalar_prefetch = 0 : i64, scratch_operands = 1 : i64, tpu.core_type = #tpu.core_type<tc>, window_params = [{transform_indices = @transform_0, window_bounds = array<i64: 8, 128>}, {transform_indices = @transform_1, window_bounds = array<i64: 8, 128>}, {transform_indices = @transform_2, window_bounds = array<i64: 1, 1>}, {transform_indices = @transform_3, window_bounds = array<i64: 1, 1>}, {transform_indices = @transform_4, window_bounds = array<i64: 1, 1>}]} {
    %c0_i32 = arith.constant 0 : i32
    %0 = arith.cmpi eq, %arg0, %c0_i32 : i32
    %1 = arith.extui %0 : i1 to i32
    %c0_i32_0 = arith.constant 0 : i32
    %2 = arith.cmpi ne, %1, %c0_i32_0 : i32
    scf.if %2 {
      %cst_11 = arith.constant 0.000000e+00 : f32
      %c0_12 = arith.constant 0 : index
      %26 = memref.load %arg6[%c0_12] : memref<2xf32, #tpu.memory_space<smem>>
      memref.store %cst_11, %arg6[%c0_12] : memref<2xf32, #tpu.memory_space<smem>>
      %cst_13 = arith.constant 0.000000e+00 : f32
      %c1_14 = arith.constant 1 : index
      %27 = memref.load %arg6[%c1_14] : memref<2xf32, #tpu.memory_space<smem>>
      memref.store %cst_13, %arg6[%c1_14] : memref<2xf32, #tpu.memory_space<smem>>
    } else {
    }
    %c0 = arith.constant 0 : index
    %c0_1 = arith.constant 0 : index
    %3 = vector.load %arg2[%c0, %c0_1] : memref<8x128xf32, #tpu.memory_space<vmem>>, vector<8x128xf32>
    %c0_2 = arith.constant 0 : index
    %c0_3 = arith.constant 0 : index
    %4 = vector.load %arg1[%c0_2, %c0_3] : memref<8x128xf32, #tpu.memory_space<vmem>>, vector<8x128xf32>
    %cst = arith.constant 1.000000e+00 : f32
    %5 = vector.broadcast %cst : f32 to vector<8x128xf32>
    %6 = arith.subf %3, %5 : vector<8x128xf32>
    %c0_4 = arith.constant 0 : index
    %7 = memref.load %arg6[%c0_4] : memref<2xf32, #tpu.memory_space<smem>>
    %8 = arith.mulf %6, %6 : vector<8x128xf32>
    %9 = vector.shape_cast %8 : vector<8x128xf32> to vector<1x8x128xf32>
    %cst_5 = arith.constant dense<0.000000e+00> : vector<1xf32>
    %10 = vector.multi_reduction <add>, %9, %cst_5 [1, 2] : vector<1x8x128xf32> to vector<1xf32>
    %11 = vector.shape_cast %10 : vector<1xf32> to vector<1x1x1xf32>
    %12 = vector.extract %11[0, 0, 0] : f32 from vector<1x1x1xf32>
    %13 = arith.addf %7, %12 : f32
    %c0_6 = arith.constant 0 : index
    %14 = memref.load %arg6[%c0_6] : memref<2xf32, #tpu.memory_space<smem>>
    memref.store %13, %arg6[%c0_6] : memref<2xf32, #tpu.memory_space<smem>>
    %c1 = arith.constant 1 : index
    %15 = memref.load %arg6[%c1] : memref<2xf32, #tpu.memory_space<smem>>
    %16 = arith.mulf %4, %4 : vector<8x128xf32>
    %17 = vector.shape_cast %16 : vector<8x128xf32> to vector<1x8x128xf32>
    %cst_7 = arith.constant dense<0.000000e+00> : vector<1xf32>
    %18 = vector.multi_reduction <add>, %17, %cst_7 [1, 2] : vector<1x8x128xf32> to vector<1xf32>
    %19 = vector.shape_cast %18 : vector<1xf32> to vector<1x1x1xf32>
    %20 = vector.extract %19[0, 0, 0] : f32 from vector<1x1x1xf32>
    %21 = arith.addf %15, %20 : f32
    %c1_8 = arith.constant 1 : index
    %22 = memref.load %arg6[%c1_8] : memref<2xf32, #tpu.memory_space<smem>>
    memref.store %21, %arg6[%c1_8] : memref<2xf32, #tpu.memory_space<smem>>
    %c0_i32_9 = arith.constant 0 : i32
    %23 = arith.cmpi eq, %arg0, %c0_i32_9 : i32
    %24 = arith.extui %23 : i1 to i32
    %c0_i32_10 = arith.constant 0 : i32
    %25 = arith.cmpi ne, %24, %c0_i32_10 : i32
    scf.if %25 {
      %c0_11 = arith.constant 0 : index
      %26 = memref.load %arg6[%c0_11] : memref<2xf32, #tpu.memory_space<smem>>
      %cst_12 = arith.constant 7.812500e-03 : f32
      %27 = arith.mulf %26, %cst_12 : f32
      %c1_13 = arith.constant 1 : index
      %28 = memref.load %arg6[%c1_13] : memref<2xf32, #tpu.memory_space<smem>>
      %cst_14 = arith.constant 7.812500e-03 : f32
      %29 = arith.mulf %28, %cst_14 : f32
      %c0_15 = arith.constant 0 : index
      %c0_16 = arith.constant 0 : index
      %30 = memref.load %arg4[%c0_15, %c0_16] : memref<1x1xf32, #tpu.memory_space<smem>>
      memref.store %27, %arg4[%c0_15, %c0_16] : memref<1x1xf32, #tpu.memory_space<smem>>
      %c0_17 = arith.constant 0 : index
      %c0_18 = arith.constant 0 : index
      %31 = memref.load %arg5[%c0_17, %c0_18] : memref<1x1xf32, #tpu.memory_space<smem>>
      memref.store %29, %arg5[%c0_17, %c0_18] : memref<1x1xf32, #tpu.memory_space<smem>>
      %32 = arith.addf %27, %29 : f32
      %c0_19 = arith.constant 0 : index
      %c0_20 = arith.constant 0 : index
      %33 = memref.load %arg3[%c0_19, %c0_20] : memref<1x1xf32, #tpu.memory_space<smem>>
      memref.store %32, %arg3[%c0_19, %c0_20] : memref<1x1xf32, #tpu.memory_space<smem>>
    } else {
    }
    return
  }
  func.func @transform_0(%arg0: i32) -> (i32, i32) {
    %c0_i32 = arith.constant 0 : i32
    %c0_i32_0 = arith.constant 0 : i32
    return %arg0, %c0_i32 : i32, i32
  }
  func.func @transform_1(%arg0: i32) -> (i32, i32) {
    %c0_i32 = arith.constant 0 : i32
    %c0_i32_0 = arith.constant 0 : i32
    return %arg0, %c0_i32 : i32, i32
  }
  func.func @transform_2(%arg0: i32) -> (i32, i32) {
    %c0_i32 = arith.constant 0 : i32
    %c0_i32_0 = arith.constant 0 : i32
    %c0_i32_1 = arith.constant 0 : i32
    return %c0_i32, %c0_i32_0 : i32, i32
  }
  func.func @transform_3(%arg0: i32) -> (i32, i32) {
    %c0_i32 = arith.constant 0 : i32
    %c0_i32_0 = arith.constant 0 : i32
    %c0_i32_1 = arith.constant 0 : i32
    return %c0_i32, %c0_i32_0 : i32, i32
  }
  func.func @transform_4(%arg0: i32) -> (i32, i32) {
    %c0_i32 = arith.constant 0 : i32
    %c0_i32_0 = arith.constant 0 : i32
    %c0_i32_1 = arith.constant 0 : i32
    return %c0_i32, %c0_i32_0 : i32, i32
  }
}

</mosaic_0001>

<bundles_post_ra>
// kernel: tpu_custom_call.1
= control target key start
LH: loop header
LB: loop body
LE: loop exit
PB: predicated region body
PF: predicated region fallthrough
CT: control target
= control target key end

     0   :  { %10 = vsyncpa [#allocation4], 0  ;;  %s290_s0 = inlined_call_operand.hbm [shape: f32[8,128], index: 0, kind: input, shape index: {}]   ;;  %s291_s1 = inlined_call_operand.hbm [shape: f32[8,128], index: 1, kind: input, shape index: {}]   ;;  %s292_s2 = inlined_call_operand.hbm [shape: f32[1,1], index: 2, kind: output, shape index: {0}]   ;;  %s293_s3 = inlined_call_operand.hbm [shape: f32[1,1], index: 3, kind: output, shape index: {1}]   ;;  %s294_s4 = inlined_call_operand.hbm [shape: f32[1,1], index: 4, kind: output, shape index: {2}]  }
   0x1   :  { %11 = vsyncpa [#allocation7], 0 }
   0x2   :  { %12 = vsyncpa [#allocation5], 0 }
   0x3   :  { %13 = vsyncpa [#allocation10], 0  ;;  %s19_s17 = sshll.u32 %s290_s0, 4  ;;  %s245_s18 = smov [#allocation3]   ;;  %s20_s17 = int_to_ptr.hbm [resolvable:$true] %s19_s17 }
   0x4   :  { %s21_s19 = sshll.u32 %s245_s18, 4  ;;  %s30_s22 = sshll.u32 %s291_s1, 4  ;;  %s22_s19 = int_to_ptr.vmem [resolvable:$true] %s21_s19  ;;  %s31_s22 = int_to_ptr.hbm [resolvable:$true] %s30_s22 }
   0x5   :  { %24 = dma.hbm_to_vmem [thread:$0]  %s20_s17, 128, %s22_s19, [#allocation4]  }
   0x6   :  { %s246_s23 = smov [#allocation6]  }
   0x7   :  { %s32_s24 = sshll.u32 %s246_s23, 4  ;;  %s33_s24 = int_to_ptr.vmem [resolvable:$true] %s32_s24 }
   0x8   :  { %35 = dma.hbm_to_vmem [thread:$0]  %s31_s22, 128, %s33_s24, [#allocation7]  }
   0x9   :  { %237 = dma.done.wait [#allocation4], 128  }
   0xa   :  { %238 = vsyncadd [#allocation4], 4294967168 }
   0xb   :  { %239 = dma.done.wait [#allocation7], 128  }
   0xc   :  { %240 = vsyncadd [#allocation7], 4294967168  ;;  %v52_v0 = vld [vmem:[#allocation6] sm:$0xff]  ;;  %v53_v3 = vld [vmem:[#allocation3] sm:$0xff]  ;;  %s111_s25 = sshll.u32 %s293_s3, 4  ;;  %s247_s28 = smov [#allocation9]   ;;  %s112_s25 = int_to_ptr.hbm [resolvable:$true] %s111_s25 }
   0xd   :  { %v141_v1 = vadd.f32 -1.0, %v52_v0  ;;  %v70_v4 = vmul.f32 %v53_v3, %v53_v3  ;;  %s120_s5 = sshll.u32 %s294_s4, 4  ;;  %s102_s9 = sshll.u32 %s292_s2, 4  ;;  %s121_s5 = int_to_ptr.hbm [resolvable:$true] %s120_s5  ;;  %s103_s9 = int_to_ptr.hbm [resolvable:$true] %s102_s9 }
   0xe   :  { %s248_s11 = smov [#allocation11]   ;;  %s249_s12 = smov [#allocation8]  }
   0xf   :  { %v56_v2 = vmul.f32 %v141_v1, %v141_v1 }
  0x11   :  { %57 = vadd.xlane.f32.xlu0 %v56_v2 }
  0x19   :  { %71 = vadd.xlane.f32.xlu0 %v70_v4 }
  0x84   :  { %v58_v5 = vpop.xlane.xlu0 %57 }
  0x85   :  { %v59_v6 = vrot.slane %v58_v5, 4 }
  0x87   :  { %v60_v7 = vadd.f32 %v59_v6, %v58_v5 }
  0x89   :  { %v61_v8 = vrot.slane %v60_v7, 2 }
  0x8b   :  { %v62_v9 = vadd.f32 %v61_v8, %v60_v7 }
  0x8c   :  { %v72_v10 = vpop.xlane.xlu0 %71 }
  0x8d   :  { %v73_v11 = vrot.slane %v72_v10, 4  ;;  %v63_v12 = vrot.slane %v62_v9, 1 }
  0x8f   :  { %v74_v13 = vadd.f32 %v73_v11, %v72_v10  ;;  %v64_v14 = vadd.f32 %v63_v12, %v62_v9 }
  0x91   :  { %v75_v15 = vrot.slane %v74_v13, 2  ;;  %144 = vpush %v64_v14 }
  0x93   :  { %v76_v16 = vadd.f32 %v75_v15, %v74_v13 }
  0x95   :  { %v77_v17 = vrot.slane %v76_v16, 1 }
  0x97   :  { %v78_v18 = vadd.f32 %v77_v17, %v76_v16 }
  0x99   :  { %146 = vpush %v78_v18 }
  0xc2   :  { %s145_s26 = spop %144 }
  0xc3   :  { %s87_s27 = smul.f32 0.0078125, %s145_s26 }
  0xc5   :  { %91 = sst [smem:[#allocation9]] %s87_s27 }
  0xc6   :  { %114 = dma.smem_to_hbm %s247_s28, 16, %s112_s25, [#allocation10]  }
  0xca   :  { %s147_s6 = spop %146 }
  0xcb   :  { %s89_s10 = smul.f32 0.0078125, %s147_s6 }
  0xcd   :  { %93 = sst [smem:[#allocation11]] %s89_s10 }
  0xce   :  { %s94_s3 = sadd.f32 %s89_s10, %s87_s27 }
  0xcf   :  { %123 = dma.smem_to_hbm %s248_s11, 16, %s121_s5, [#allocation10]  }
  0xd0   :  { %96 = sst [smem:[#allocation8]] %s94_s3 }
  0xd1   :  { %105 = dma.smem_to_hbm %s249_s12, 16, %s103_s9, [#allocation5]  }
  0xd2   :  { %241 = dma.done.wait [#allocation5], 16  }
  0xd3   :  { %242 = vsyncadd [#allocation5], 4294967280 }
  0xd4   :  { %243 = dma.done.wait [#allocation10], 32  }
  0xd5   :  { %244 = vsyncadd [#allocation10], 4294967264 }
  0xd6   :  { %136 = sfence }
  0xd7   :  { %137 = vsyncpa [#allocation4], 1 }
  0xd8   :  { %138 = vsyncpa [#allocation7], 1 }
  0xd9   :  { %139 = vsyncpa [#allocation5], 1 }
  0xda   :  { %140 = vsyncpa [#allocation10], 1 }

</bundles_post_ra>
